<compile_context>
chip_gen: v6e
topology: v6e:2x2x1
jax: 0.10.0
libtpu: 0.0.40
codegen_flags: <defaults>
</compile_context>

<pallas_src>
import functools

import jax
import jax.numpy as jnp
from jax.experimental import pallas as pl
from jax.experimental.pallas import tpu as pltpu


# ------------------------------ tile selection ------------------------------ #
def _round_up(x, m):
    return ((x + m - 1) // m) * m


def _pick_tb(B):
    for tb in (8, 4, 2, 1):
        if B % tb == 0:
            return tb
    return 1


def _pick_tn(N, D, tb, itemsize, target_bytes=4 * 1024 * 1024):
    # sublane multiple: 8 for 32-bit, 16 for 16-bit, 32 for 8-bit dtypes
    if itemsize >= 4:
        mult = 8
    elif itemsize == 2:
        mult = 16
    else:
        mult = 32
    tn = target_bytes // max(1, tb * D * itemsize)
    tn = max(mult, (tn // mult) * mult)
    tn = min(tn, _round_up(N, mult))
    return tn


_COMPILER_PARAMS = pltpu.CompilerParams(
    dimension_semantics=("parallel", "arbitrary"),
    vmem_limit_bytes=32 * 1024 * 1024,
)


# ------------------------------- unmasked mean ------------------------------ #
def _mean_kernel(seq_ref, out_ref, acc_ref, *, n_total, tn, needs_mask):
    # grid = (B // tb, ceil(N / tn)); seq block (tb, tn, D); out block (tb, D)
    n = pl.program_id(1)

    @pl.when(n == 0)
    def _():
        acc_ref[...] = jnp.zeros_like(acc_ref)

    s = seq_ref[...].astype(jnp.float32)  # (tb, tn, D)
    if needs_mask:
        row = jax.lax.broadcasted_iota(jnp.int32, (1, tn, 1), 1)
        valid = (n * tn + row) < n_total
        s = jnp.where(valid, s, 0.0)
    acc_ref[...] += jnp.sum(s, axis=1)  # (tb, D)

    @pl.when(n == pl.num_programs(1) - 1)
    def _():
        out_ref[...] = (acc_ref[...] * (1.0 / n_total)).astype(out_ref.dtype)


def _avg_readout_unmasked(seq, *, tn=None, tb=None):
    B, N, D = seq.shape
    tb = _pick_tb(B) if tb is None else tb
    tn = _pick_tn(N, D, tb, seq.dtype.itemsize) if tn is None else tn
    kernel = functools.partial(
        _mean_kernel, n_total=N, tn=tn, needs_mask=(N % tn != 0)
    )
    return pl.pallas_call(
        kernel,
        out_shape=jax.ShapeDtypeStruct((B, D), seq.dtype),
        grid_spec=pltpu.PrefetchScalarGridSpec(
            num_scalar_prefetch=0,
            grid=(B // tb, pl.cdiv(N, tn)),
            in_specs=[pl.BlockSpec((tb, tn, D), lambda b, n: (b, n, 0))],
            out_specs=pl.BlockSpec((tb, D), lambda b, n: (b, 0)),
            scratch_shapes=[pltpu.VMEM((tb, D), jnp.float32)],
        ),
        compiler_params=_COMPILER_PARAMS,
    )(seq)


# ------------------------------- masked readout ----------------------------- #
def _masked_kernel(inv_den_ref, seq_ref, msk_ref, out_ref, acc_ref,
                   *, n_total, tn, needs_mask):
    # grid = (B // tb, ceil(N / tn)); seq block (tb, tn, D); msk block (tb, tn, 1)
    # inv_den_ref: (1,) f32 in SMEM (global 1 / sum(msk), computed in wrapper)
    n = pl.program_id(1)

    @pl.when(n == 0)
    def _():
        acc_ref[...] = jnp.zeros_like(acc_ref)

    s = seq_ref[...].astype(jnp.float32)  # (tb, tn, D)
    m = msk_ref[...].astype(jnp.float32)  # (tb, tn, 1)
    prod = s * m
    if needs_mask:
        row = jax.lax.broadcasted_iota(jnp.int32, (1, tn, 1), 1)
        valid = (n * tn + row) < n_total
        prod = jnp.where(valid, prod, 0.0)
    acc_ref[...] += jnp.sum(prod, axis=1)  # (tb, D)

    @pl.when(n == pl.num_programs(1) - 1)
    def _():
        out_ref[...] = (acc_ref[...] * inv_den_ref[0]).astype(out_ref.dtype)


def _avg_readout_masked(seq, msk, *, tn=None, tb=None):
    B, N, D = seq.shape
    tb = _pick_tb(B) if tb is None else tb
    tn = _pick_tn(N, D, tb, seq.dtype.itemsize) if tn is None else tn
    # Global scalar denominator over ALL of msk. msk is tiny (B*N values), so a
    # plain-JAX reduction here is cheap and lets the batch grid axis be parallel.
    inv_den = (1.0 / jnp.sum(msk.astype(jnp.float32))).reshape(1)
    kernel = functools.partial(
        _masked_kernel, n_total=N, tn=tn, needs_mask=(N % tn != 0)
    )
    return pl.pallas_call(
        kernel,
        out_shape=jax.ShapeDtypeStruct((B, D), seq.dtype),
        grid_spec=pltpu.PrefetchScalarGridSpec(
            num_scalar_prefetch=0,
            grid=(B // tb, pl.cdiv(N, tn)),
            in_specs=[
                pl.BlockSpec(memory_space=pltpu.MemorySpace.SMEM),
                pl.BlockSpec((tb, tn, D), lambda b, n: (b, n, 0)),
                pl.BlockSpec((tb, tn, 1), lambda b, n: (b, n, 0)),
            ],
            out_specs=pl.BlockSpec((tb, D), lambda b, n: (b, 0)),
            scratch_shapes=[pltpu.VMEM((tb, D), jnp.float32)],
        ),
        compiler_params=_COMPILER_PARAMS,
    )(inv_den, seq, msk)


def avg_readout(seq, msk=None, *, tn=None, tb=None):
    """Pallas equivalent of AvgReadout.forward(seq, msk)."""
    if msk is None:
        return _avg_readout_unmasked(seq, tn=tn, tb=tb)
    return _avg_readout_masked(seq, msk, tn=tn, tb=tb)


# ----------------------------------- driver --------------------------------- #
if __name__ == "__main__":
    key = jax.random.PRNGKey(0)
    k1, k2, k3, k4 = jax.random.split(key, 4)

    # Case 1: tile-aligned shapes (batch, nodes, hidden)
    B, N, D = 2, 16, 32
    seq = jax.random.normal(k1, (B, N, D), dtype=jnp.float32)
    msk = (jax.random.uniform(k2, (B, N, 1)) > 0.3).astype(jnp.float32)

    out_mean = jax.block_until_ready(avg_readout(seq))
    ref_mean = jnp.mean(seq, axis=1)
    out_mask = jax.block_until_ready(avg_readout(seq, msk))
    ref_mask = jnp.sum(seq * msk, axis=1) / jnp.sum(msk)

    assert out_mean.shape == (B, D) and out_mask.shape == (B, D)
    assert jnp.allclose(out_mean, ref_mean, atol=1e-5, rtol=1e-5)
    assert jnp.allclose(out_mask, ref_mask, atol=1e-5, rtol=1e-5)

    # Case 2: non-divisible node count (tail masking) and odd batch
    B2, N2, D2 = 3, 20, 32
    seq2 = jax.random.normal(k3, (B2, N2, D2), dtype=jnp.float32)
    msk2 = (jax.random.uniform(k4, (B2, N2, 1)) > 0.5).astype(jnp.float32)

    out_mean2 = jax.block_until_ready(avg_readout(seq2))
    ref_mean2 = jnp.mean(seq2, axis=1)
    out_mask2 = jax.block_until_ready(avg_readout(seq2, msk2))
    ref_mask2 = jnp.sum(seq2 * msk2, axis=1) / jnp.sum(msk2)

    assert jnp.allclose(out_mean2, ref_mean2, atol=1e-5, rtol=1e-5)
    assert jnp.allclose(out_mask2, ref_mask2, atol=1e-5, rtol=1e-5)

    print("KERNEL_OK")
</pallas_src>

<mosaic_0001>
module attributes {stable_mosaic.version = 11 : i64} {
  func.func @_mean_kernel(%arg0: i32, %arg1: i32, %arg2: memref<2x16x32xf32, #tpu.memory_space<vmem>>, %arg3: memref<2x32xf32, #tpu.memory_space<vmem>>, %arg4: memref<2x32xf32, #tpu.memory_space<vmem>>) attributes {dimension_semantics = [#tpu.dimension_semantics<parallel>, #tpu.dimension_semantics<arbitrary>], iteration_bounds = array<i64: 1, 1>, scalar_prefetch = 0 : i64, scratch_operands = 1 : i64, tpu.core_type = #tpu.core_type<tc>, window_params = [{transform_indices = @transform_0, window_bounds = array<i64: 2, 16, 32>}, {transform_indices = @transform_1, window_bounds = array<i64: 2, 32>}]} {
    %c0_i32 = arith.constant 0 : i32
    %0 = arith.cmpi eq, %arg1, %c0_i32 : i32
    %1 = arith.extui %0 : i1 to i32
    %c0_i32_0 = arith.constant 0 : i32
    %2 = arith.cmpi ne, %1, %c0_i32_0 : i32
    scf.if %2 {
      %cst_9 = arith.constant 0.000000e+00 : f32
      %11 = vector.broadcast %cst_9 : f32 to vector<2x32xf32>
      %c0_10 = arith.constant 0 : index
      %c0_11 = arith.constant 0 : index
      %12 = vector.load %arg4[%c0_10, %c0_11] : memref<2x32xf32, #tpu.memory_space<vmem>>, vector<2x32xf32>
      tpu.vector_store %arg4[%c0_10, %c0_11], %11 {strides = array<i32>} : memref<2x32xf32, #tpu.memory_space<vmem>>, vector<2x32xf32>,
    } else {
    }
    %c0 = arith.constant 0 : index
    %c0_1 = arith.constant 0 : index
    %c0_2 = arith.constant 0 : index
    %3 = vector.load %arg2[%c0, %c0_1, %c0_2] : memref<2x16x32xf32, #tpu.memory_space<vmem>>, vector<2x16x32xf32>
    %c0_3 = arith.constant 0 : index
    %c0_4 = arith.constant 0 : index
    %4 = vector.load %arg4[%c0_3, %c0_4] : memref<2x32xf32, #tpu.memory_space<vmem>>, vector<2x32xf32>
    %cst = arith.constant dense<0.000000e+00> : vector<2x32xf32>
    %5 = vector.multi_reduction <add>, %3, %cst [1] : vector<2x16x32xf32> to vector<2x32xf32>
    %6 = arith.addf %4, %5 : vector<2x32xf32>
    %c0_5 = arith.constant 0 : index
    %c0_6 = arith.constant 0 : index
    %7 = vector.load %arg4[%c0_5, %c0_6] : memref<2x32xf32, #tpu.memory_space<vmem>>, vector<2x32xf32>
    tpu.vector_store %arg4[%c0_5, %c0_6], %6 {strides = array<i32>} : memref<2x32xf32, #tpu.memory_space<vmem>>, vector<2x32xf32>,
    %c0_i32_7 = arith.constant 0 : i32
    %8 = arith.cmpi eq, %arg1, %c0_i32_7 : i32
    %9 = arith.extui %8 : i1 to i32
    %c0_i32_8 = arith.constant 0 : i32
    %10 = arith.cmpi ne, %9, %c0_i32_8 : i32
    scf.if %10 {
      %c0_9 = arith.constant 0 : index
      %c0_10 = arith.constant 0 : index
      %11 = vector.load %arg4[%c0_9, %c0_10] : memref<2x32xf32, #tpu.memory_space<vmem>>, vector<2x32xf32>
      %cst_11 = arith.constant 6.250000e-02 : f32
      %12 = vector.broadcast %cst_11 : f32 to vector<2x32xf32>
      %13 = arith.mulf %11, %12 : vector<2x32xf32>
      %c0_12 = arith.constant 0 : index
      %c0_13 = arith.constant 0 : index
      %14 = vector.load %arg3[%c0_12, %c0_13] : memref<2x32xf32, #tpu.memory_space<vmem>>, vector<2x32xf32>
      tpu.vector_store %arg3[%c0_12, %c0_13], %13 {strides = array<i32>} : memref<2x32xf32, #tpu.memory_space<vmem>>, vector<2x32xf32>,
    } else {
    }
    return
  }
  func.func @transform_0(%arg0: i32, %arg1: i32) -> (i32, i32, i32) {
    %c0_i32 = arith.constant 0 : i32
    %c0_i32_0 = arith.constant 0 : i32
    return %arg0, %arg1, %c0_i32 : i32, i32, i32
  }
  func.func @transform_1(%arg0: i32, %arg1: i32) -> (i32, i32) {
    %c0_i32 = arith.constant 0 : i32
    %c0_i32_0 = arith.constant 0 : i32
    return %arg0, %c0_i32 : i32, i32
  }
}

</mosaic_0001>

<bundles_post_ra>
// kernel: tpu_custom_call.1
= control target key start
LH: loop header
LB: loop body
LE: loop exit
PB: predicated region body
PF: predicated region fallthrough
CT: control target
= control target key end

     0   :  { %6 = vsyncpa [#allocation4], 0  ;;  %s155_s0 = inlined_call_operand.hbm [shape: f32[2,16,32], index: 0, kind: input, shape index: {}]   ;;  %s156_s1 = inlined_call_operand.hbm [shape: f32[2,32], index: 1, kind: output, shape index: {}]  }
   0x1   :  { %7 = vsyncpa [#allocation5], 0  ;;  %s131_s6 = smov [#allocation3]  }
   0x2   :  { %s13_s7 = sshll.u32 %s131_s6, 4  ;;  %s14_s7 = int_to_ptr.vmem [resolvable:$true] %s13_s7 }
   0x3   :  { %s95_s8 = scalar_lea.vmem %s14_s7, 512  ;;  %p100_p1 = scmp.lt.s32.totalorder %s14_s7, %s14_s7 }
   0x4   :  { %p96_p0 = scmp.ne.s32.totalorder %s14_s7, %s95_s8  ;;  %p101_p2 = scmp.lt.s32.totalorder %s95_s8, %s95_s8 }
   0x6   :  { %p102_p3 = por %p101_p2, %p100_p1 }
   0x8   :  { %p103_p4 = pnand %p102_p3, %p96_p0 }
   0xa   :  { %106 = shalt.err (!%p103_p4)
}
   0xb   :  { %s132_s9 = smov 128   ;;  %s133_s10 = smov 8  }
   0xc   :  { %19 = dma.hbm_to_vmem [thread:$0]  %s155_s0, 512, %s14_s7, [#allocation4], %s132_s9, %s132_s9, %s133_s10  }
   0xd   :  { %127 = dma.done.wait [#allocation4], 512  }
   0xe   :  { %128 = vsyncadd [#allocation4], 4294966784  ;;  %vm27_vm0 = vcmask 254976   ;;  %v134_v0 = vmov 0.0   ;;  %vm34_vm1 = vcmask 261120   ;;  %v29_v1 = vld [vmem:[#allocation3] sm:$0xff] }
   0xf   :  { %28 = vst.msk [vmem:[#allocation2] sm:$0x3] %vm27_vm0, %v134_v0  ;;  %v30_v2 = vld [vmem:[#allocation3 + $0x8] sm:$0xff]  ;;  %v31_v3 = vld [vmem:[#allocation3 + $0x10] sm:$0xff]  ;;  %v32_v4 = vld [vmem:[#allocation3 + $0x18] sm:$0xff]  ;;  %v35_v5 = vsel %vm34_vm1, %v29_v1, 0.0 }
  0x10   :  { %v36_v6 = vsel %vm34_vm1, %v30_v2, 0.0  ;;  %v44_v7 = vsel %vm34_vm1, %v31_v3, 0.0  ;;  %v45_v9 = vsel %vm34_vm1, %v32_v4, 0.0  ;;  %vm55_vm2 = vcmask 1041409   ;;  %s135_s0 = smov [#allocation6]  }
  0x11   :  { %v37_v8 = vadd.f32 %v36_v6, %v35_v5  ;;  %v46_v10 = vadd.f32 %v45_v9, %v44_v7  ;;  %s73_s13 = sshll.u32 %s135_s0, 4  ;;  %s74_s13 = int_to_ptr.vmem [resolvable:$true] %s73_s13 }
  0x12   :  { %s107_s14 = scalar_lea.vmem %s74_s13, 32  ;;  %p112_p6 = scmp.lt.s32.totalorder %s74_s13, %s74_s13 }
  0x13   :  { %v38_v11 = vrot.slane %v37_v8, 4  ;;  %v47_v12 = vrot.slane %v46_v10, 4  ;;  %p108_p5 = scmp.ne.s32.totalorder %s74_s13, %s107_s14  ;;  %p113_p7 = scmp.lt.s32.totalorder %s107_s14, %s107_s14 }
  0x15   :  { %v39_v13 = vadd.f32 %v38_v11, %v37_v8  ;;  %v48_v14 = vadd.f32 %v47_v12, %v46_v10  ;;  %p114_p8 = por %p113_p7, %p112_p6 }
  0x16   :  { %v33_v22 = vld [vmem:[#allocation2] sm:$0x3] }
  0x17   :  { %v40_v15 = vrot.slane %v39_v13, 2  ;;  %v49_v16 = vrot.slane %v48_v14, 2  ;;  %p115_p9 = pnand %p114_p8, %p108_p5 }
  0x19   :  { %v41_v17 = vadd.f32 %v40_v15, %v39_v13  ;;  %v50_v18 = vadd.f32 %v49_v16, %v48_v14 }
  0x1b   :  { %v42_v19 = vrot.slane %v41_v17, 1  ;;  %v51_v20 = vrot.slane %v50_v18, 1 }
  0x1d   :  { %v43_v21 = vadd.f32 %v42_v19, %v41_v17  ;;  %v52_v23 = vadd.f32 %v51_v20, %v50_v18 }
  0x1f   :  { %v56_v24 = vsel %vm55_vm2, %v52_v23, %v43_v21 }
  0x20   :  { %v58_v25 = vadd.f32 %v56_v24, %v33_v22 }
  0x22   :  { %60 = vst.msk [vmem:[#allocation2] sm:$0x3] %vm27_vm0, %v58_v25 }
  0x29   :  { %v64_v26 = vld [vmem:[#allocation2] sm:$0x3] }
  0x2a   :  { %v65_v27 = vmul.f32 0.0625, %v64_v26 }
  0x2c   :  { %66 = vst.msk [vmem:[#allocation6] sm:$0x3] %vm27_vm0, %v65_v27 }
  0x2d   :  { %118 = shalt.err (!%p115_p9)
}
  0x2e   :  { %76 = dma.vmem_to_hbm [thread:$0]  %s74_s13, 32, %s156_s1, [#allocation5]  }
  0x2f   :  { %129 = dma.done.wait [#allocation5], 32  }
  0x30   :  { %130 = vsyncadd [#allocation5], 4294967264 }
  0x31   :  { %80 = vsyncpa [#allocation4], 1 }
  0x32   :  { %81 = vsyncpa [#allocation5], 1 }

</bundles_post_ra>
